<compile_context>
chip_gen: v5e
topology: v5e:2x2
jax: 0.10.0
libtpu: 0.0.40
codegen_flags: <defaults>
</compile_context>

<pallas_src>
import math

import jax
import jax.numpy as jnp
from jax import lax
from jax.experimental import pallas as pl
from jax.experimental.pallas import tpu as pltpu

EPS = 1e-7
_TINY = 1e-12
LANES = 128        # vreg lane width
CR = 8             # compute strip: 8 sublanes x 128 lanes = 1 vreg per temp
TR_MAX = 256       # max DMA tile rows (256 x 128 = 32768 anchors per tile)
STEPS_TARGET = 4   # aim for ~4 inner grid steps per core


def _cdiv(a, b):
    return -(-a // b)


def _round_up(a, m):
    return _cdiv(a, m) * m


def _num_tensorcores():
    """TensorCores per chip: 2 on v7x, 1 on v5e/v6e.  Trace-time query with a
    device_kind fallback; any failure defaults to the safe value 1."""
    try:
        info = pltpu.get_tpu_info()
        for attr in ("num_cores", "num_tensorcores", "tensorcore_count"):
            n = getattr(info, attr, None)
            if isinstance(n, int) and n in (1, 2):
                return n
    except Exception:
        pass
    kind = str(getattr(jax.devices()[0], "device_kind", "")).lower()
    return 2 if ("v7" in kind or "7x" in kind) else 1


def _recip(x, refine=True):
    """1/x via the EUP approximate reciprocal (off the VALU slot).

    refine=True adds one Newton-Raphson step (~f32 accuracy).  On v7x, where
    this kernel is VALU-bound, refine=False can be used for accuracy-
    non-critical denominators (alpha, atan argument) to trim VALU ops."""
    r = pl.reciprocal(x, approx=True)
    if refine:
        r = r * (2.0 - x * r)
    return r


def _atan(x):
    """Vectorized atan (Cephes atanf-style range reduction, ~1e-7 accurate),
    built only from mul/add/abs/where/reciprocal ops that lower in Mosaic."""
    sgn = jnp.where(x >= 0.0, 1.0, -1.0)
    ax = jnp.abs(x)
    t3p8 = 2.414213562373095   # tan(3*pi/8)
    tp8 = 0.4142135623730950   # tan(pi/8)
    big = ax > t3p8
    mid = jnp.logical_and(ax > tp8, jnp.logical_not(big))
    inv = -_recip(jnp.maximum(ax, _TINY))
    frac = (ax - 1.0) * _recip(ax + 1.0)
    xr = jnp.where(big, inv, jnp.where(mid, frac, ax))
    y0 = jnp.where(big, 0.5 * math.pi, jnp.where(mid, 0.25 * math.pi, 0.0))
    z = xr * xr
    p = ((((8.05374449538e-2 * z - 1.38776856032e-1) * z
           + 1.99777106478e-1) * z - 3.33329491539e-1) * z) * xr + xr
    return sgn * (y0 + p)


def _ciou(b1x1, b1y1, b1x2, b1y2, b2x1, b2y1, b2x2, b2y2):
    """Complete-IoU on (CR, 128) tiles — same math as the torch reference."""
    w1 = b1x2 - b1x1
    h1 = b1y2 - b1y1 + EPS
    w2 = b2x2 - b2x1
    h2 = b2y2 - b2y1 + EPS

    inter = (jnp.maximum(jnp.minimum(b1x2, b2x2) - jnp.maximum(b1x1, b2x1), 0.0)
             * jnp.maximum(jnp.minimum(b1y2, b2y2) - jnp.maximum(b1y1, b2y1), 0.0))
    union = w1 * h1 + w2 * h2 - inter + EPS
    iou = inter * _recip(union)

    cw = jnp.maximum(b1x2, b2x2) - jnp.minimum(b1x1, b2x1)
    ch = jnp.maximum(b1y2, b2y2) - jnp.minimum(b1y1, b2y1)
    c2 = cw * cw + ch * ch + EPS

    dx = b2x1 + b2x2 - b1x1 - b1x2
    dy = b2y1 + b2y2 - b1y1 - b1y2
    rho2 = (dx * dx + dy * dy) * 0.25

    # atan(w2/h2) - atan(w1/h1) via the difference identity:
    #   atan(a) - atan(b) = atan((a-b)/(1+ab))   (+/- pi when ab < -1)
    # One polynomial + one reciprocal instead of two of each.
    num = w2 * h1 - w1 * h2               # (a-b) * h1*h2
    den = h1 * h2 + w1 * w2               # (1+ab) * h1*h2
    den = den + jnp.where(den < 0.0, -_TINY, _TINY)   # sign-preserving guard
    d_atan = _atan(num * _recip(den))
    # Quadrant fixup (only reachable for degenerate negative-size boxes).
    d_atan = d_atan + jnp.where(
        den < 0.0, jnp.where(w2 * h2 > 0.0, math.pi, -math.pi), 0.0)

    v = (4.0 / (math.pi ** 2)) * d_atan * d_atan
    # torch.no_grad() on alpha is forward-identical.
    alpha = v * _recip(v - iou + (1.0 + EPS))
    return iou - (rho2 * _recip(c2) + v * alpha)


def _make_kernel(tr, cr):
    n_chunks = tr // cr
    unroll = min(8, n_chunks)

    def kernel(data_ref, out_ref):
        # data_ref: (9, TR, 128) — planes 0-3 pred, 4-7 target, 8 weight.
        # out_ref : (1, CR, 128) per-core partial-sum block, VMEM-resident
        #           across the inner ("arbitrary") grid axis.
        i = pl.program_id(1)

        @pl.when(i == 0)
        def _():
            out_ref[0] = jnp.zeros((cr, LANES), jnp.float32)

        def chunk(j, acc):
            base = pl.multiple_of(j * cr, cr)
            sl = pl.ds(base, cr)
            b1x1 = data_ref[0, sl, :]
            b1y1 = data_ref[1, sl, :]
            b1x2 = data_ref[2, sl, :]
            b1y2 = data_ref[3, sl, :]
            b2x1 = data_ref[4, sl, :]
            b2y1 = data_ref[5, sl, :]
            b2x2 = data_ref[6, sl, :]
            b2y2 = data_ref[7, sl, :]
            weight = data_ref[8, sl, :]
            ciou = _ciou(b1x1, b1y1, b1x2, b1y2, b2x1, b2y1, b2x2, b2y2)
            # masked_select-before-IoU semantics: background / padded anchors
            # (weight exactly 0) contribute exactly 0 even if CIoU is
            # non-finite on their degenerate boxes.
            contrib = jnp.where(weight != 0.0, (1.0 - ciou) * weight, 0.0)
            return acc + contrib

        acc = lax.fori_loop(0, n_chunks, chunk,
                            jnp.zeros((cr, LANES), jnp.float32),
                            unroll=unroll)
        out_ref[0] += acc

    return kernel


@jax.jit
def box_loss(pred_bboxes, target_bboxes, target_scores, target_scores_sum,
             fg_mask):
    B, N, _ = pred_bboxes.shape
    M = B * N
    f32 = jnp.float32

    ncores = _num_tensorcores()

    # Anchor axis -> (rows, 128 lanes); rows tiled TR at a time per core.
    R0 = _cdiv(M, LANES)
    tr = _cdiv(R0, ncores * STEPS_TARGET)
    tr = max(CR, min(TR_MAX, tr))
    TR = _round_up(tr, CR)
    steps = _cdiv(R0, ncores * TR)
    R = ncores * TR * steps
    M_pad = R * LANES

    pred = pred_bboxes.reshape(M, 4).astype(f32)
    tgt = target_bboxes.reshape(M, 4).astype(f32)
    # Class-summed weight with fg_mask folded in: kernel never streams the
    # (.., C) scores tensor nor a separate mask plane.
    weight = jnp.where(fg_mask.reshape(M),
                       target_scores.astype(f32).sum(-1).reshape(M), 0.0)

    # Single contiguous coordinate-major slab: (9, M) -> pad -> (9, R, 128).
    data = jnp.concatenate([pred.T, tgt.T, weight[None, :]], axis=0)
    pad = M_pad - M
    if pad:
        data = jnp.pad(data, ((0, 0), (0, pad)))
    data = data.reshape(9, R, LANES)

    kernel = _make_kernel(TR, CR)

    partial_sums = pl.pallas_call(
        kernel,
        out_shape=jax.ShapeDtypeStruct((ncores, CR, LANES), f32),
        grid_spec=pltpu.PrefetchScalarGridSpec(
            num_scalar_prefetch=0,
            grid=(ncores, steps),
            in_specs=[pl.BlockSpec((9, TR, LANES),
                                   lambda c, i: (0, c * steps + i, 0))],
            out_specs=pl.BlockSpec((1, CR, LANES), lambda c, i: (c, 0, 0)),
        ),
        compiler_params=pltpu.CompilerParams(
            dimension_semantics=("parallel", "arbitrary"),
            allow_input_fusion=[True],
        ),
    )(data)

    # Tiny follow-up: sum of ncores*8*128 values fused with the final divide.
    return jnp.sum(partial_sums) / target_scores_sum


# ----------------------------- pure-JAX reference -----------------------------
def _ref_box_loss(pred, tgt, scores, scores_sum, mask):
    b1x1, b1y1, b1x2, b1y2 = jnp.split(pred, 4, axis=-1)
    b2x1, b2y1, b2x2, b2y2 = jnp.split(tgt, 4, axis=-1)
    w1, h1 = b1x2 - b1x1, b1y2 - b1y1 + EPS
    w2, h2 = b2x2 - b2x1, b2y2 - b2y1 + EPS
    inter = (jnp.clip(jnp.minimum(b1x2, b2x2) - jnp.maximum(b1x1, b2x1), 0)
             * jnp.clip(jnp.minimum(b1y2, b2y2) - jnp.maximum(b1y1, b2y1), 0))
    union = w1 * h1 + w2 * h2 - inter + EPS
    iou = inter / union
    cw = jnp.maximum(b1x2, b2x2) - jnp.minimum(b1x1, b2x1)
    ch = jnp.maximum(b1y2, b2y2) - jnp.minimum(b1y1, b2y1)
    c2 = cw ** 2 + ch ** 2 + EPS
    rho2 = ((b2x1 + b2x2 - b1x1 - b1x2) ** 2
            + (b2y1 + b2y2 - b1y1 - b1y2) ** 2) / 4
    v = 4 / math.pi ** 2 * (jnp.arctan(w2 / h2) - jnp.arctan(w1 / h1)) ** 2
    alpha = v / (v - iou + (1 + EPS))
    ciou = (iou - (rho2 / c2 + v * alpha))[..., 0]          # (B, N)
    weight = scores.sum(-1)                                  # (B, N)
    # masked_select + sum  ==  mask-multiplied sum (all masked terms finite)
    return ((1.0 - ciou) * weight * mask.astype(jnp.float32)).sum() / scores_sum


if __name__ == "__main__":
    key = jax.random.PRNGKey(0)
    B, N, C = 2, 128, 4

    k1, k2, k3, k4, k5, k6, k7 = jax.random.split(key, 7)

    def make_boxes(ka, kb):
        xy = jax.random.uniform(ka, (B, N, 2), dtype=jnp.float32)
        wh = jax.random.uniform(kb, (B, N, 2), dtype=jnp.float32,
                                minval=0.05, maxval=1.0)
        return jnp.concatenate([xy, xy + wh], axis=-1)       # x1,y1,x2,y2

    pred_bboxes = make_boxes(k1, k2)
    target_bboxes = make_boxes(k3, k4)
    target_scores = jax.random.uniform(k5, (B, N, C), dtype=jnp.float32)
    fg_mask = jax.random.bernoulli(k6, 0.5, (B, N))
    target_scores_sum = jnp.maximum(target_scores.sum(), 1.0)

    loss = box_loss(pred_bboxes, target_bboxes, target_scores,
                    target_scores_sum, fg_mask)
    jax.block_until_ready(loss)

    ref = _ref_box_loss(pred_bboxes, target_bboxes, target_scores,
                        target_scores_sum, fg_mask)
    assert jnp.allclose(loss, ref, rtol=1e-4, atol=1e-5), (loss, ref)

    print("KERNEL_OK")
</pallas_src>

<mosaic_0001>
module attributes {stable_mosaic.version = 11 : i64} {
  func.func @kernel(%arg0: i32, %arg1: i32, %arg2: memref<9x8x128xf32, #tpu.memory_space<vmem>>, %arg3: memref<1x8x128xf32, #tpu.memory_space<vmem>>) attributes {dimension_semantics = [#tpu.dimension_semantics<parallel>, #tpu.dimension_semantics<arbitrary>], iteration_bounds = array<i64: 1, 1>, scalar_prefetch = 0 : i64, scratch_operands = 0 : i64, tpu.core_type = #tpu.core_type<tc>, window_params = [{transform_indices = @transform_0, window_bounds = array<i64: 9, 8, 128>}, {transform_indices = @transform_1, window_bounds = array<i64: 1, 8, 128>}]} {
    %c0_i32 = arith.constant 0 : i32
    %0 = arith.cmpi eq, %arg1, %c0_i32 : i32
    %1 = arith.extui %0 : i1 to i32
    %c0_i32_0 = arith.constant 0 : i32
    %2 = arith.cmpi ne, %1, %c0_i32_0 : i32
    scf.if %2 {
      %cst_60 = arith.constant 0.000000e+00 : f32
      %204 = vector.broadcast %cst_60 : f32 to vector<8x128xf32>
      %c0_61 = arith.constant 0 : index
      %c0_62 = arith.constant 0 : index
      %c0_63 = arith.constant 0 : index
      %205 = vector.load %arg3[%c0_61, %c0_62, %c0_63] : memref<1x8x128xf32, #tpu.memory_space<vmem>>, vector<1x8x128xf32>
      %206 = vector.shape_cast %205 : vector<1x8x128xf32> to vector<8x128xf32>
      %207 = vector.shape_cast %204 : vector<8x128xf32> to vector<1x8x128xf32>
      tpu.vector_store %arg3[%c0_61, %c0_62, %c0_63], %207 {strides = array<i32>} : memref<1x8x128xf32, #tpu.memory_space<vmem>>, vector<1x8x128xf32>,
    } else {
    }
    %cst = arith.constant 0.000000e+00 : f32
    %3 = vector.broadcast %cst : f32 to vector<8x128xf32>
    %c0_i32_1 = arith.constant 0 : i32
    %c8_i32 = arith.constant 8 : i32
    %4 = arith.muli %c0_i32_1, %c8_i32 : i32
    %5 = tpu.assume_multiple %4, 8 : i32
    %c0 = arith.constant 0 : index
    %6 = arith.index_cast %5 : i32 to index
    %c0_2 = arith.constant 0 : index
    %7 = vector.load %arg2[%c0, %6, %c0_2] : memref<9x8x128xf32, #tpu.memory_space<vmem>>, vector<1x8x128xf32>
    %8 = vector.shape_cast %7 : vector<1x8x128xf32> to vector<8x128xf32>
    %c1 = arith.constant 1 : index
    %9 = arith.index_cast %5 : i32 to index
    %c0_3 = arith.constant 0 : index
    %10 = vector.load %arg2[%c1, %9, %c0_3] : memref<9x8x128xf32, #tpu.memory_space<vmem>>, vector<1x8x128xf32>
    %11 = vector.shape_cast %10 : vector<1x8x128xf32> to vector<8x128xf32>
    %c2 = arith.constant 2 : index
    %12 = arith.index_cast %5 : i32 to index
    %c0_4 = arith.constant 0 : index
    %13 = vector.load %arg2[%c2, %12, %c0_4] : memref<9x8x128xf32, #tpu.memory_space<vmem>>, vector<1x8x128xf32>
    %14 = vector.shape_cast %13 : vector<1x8x128xf32> to vector<8x128xf32>
    %c3 = arith.constant 3 : index
    %15 = arith.index_cast %5 : i32 to index
    %c0_5 = arith.constant 0 : index
    %16 = vector.load %arg2[%c3, %15, %c0_5] : memref<9x8x128xf32, #tpu.memory_space<vmem>>, vector<1x8x128xf32>
    %17 = vector.shape_cast %16 : vector<1x8x128xf32> to vector<8x128xf32>
    %c4 = arith.constant 4 : index
    %18 = arith.index_cast %5 : i32 to index
    %c0_6 = arith.constant 0 : index
    %19 = vector.load %arg2[%c4, %18, %c0_6] : memref<9x8x128xf32, #tpu.memory_space<vmem>>, vector<1x8x128xf32>
    %20 = vector.shape_cast %19 : vector<1x8x128xf32> to vector<8x128xf32>
    %c5 = arith.constant 5 : index
    %21 = arith.index_cast %5 : i32 to index
    %c0_7 = arith.constant 0 : index
    %22 = vector.load %arg2[%c5, %21, %c0_7] : memref<9x8x128xf32, #tpu.memory_space<vmem>>, vector<1x8x128xf32>
    %23 = vector.shape_cast %22 : vector<1x8x128xf32> to vector<8x128xf32>
    %c6 = arith.constant 6 : index
    %24 = arith.index_cast %5 : i32 to index
    %c0_8 = arith.constant 0 : index
    %25 = vector.load %arg2[%c6, %24, %c0_8] : memref<9x8x128xf32, #tpu.memory_space<vmem>>, vector<1x8x128xf32>
    %26 = vector.shape_cast %25 : vector<1x8x128xf32> to vector<8x128xf32>
    %c7 = arith.constant 7 : index
    %27 = arith.index_cast %5 : i32 to index
    %c0_9 = arith.constant 0 : index
    %28 = vector.load %arg2[%c7, %27, %c0_9] : memref<9x8x128xf32, #tpu.memory_space<vmem>>, vector<1x8x128xf32>
    %29 = vector.shape_cast %28 : vector<1x8x128xf32> to vector<8x128xf32>
    %c8 = arith.constant 8 : index
    %30 = arith.index_cast %5 : i32 to index
    %c0_10 = arith.constant 0 : index
    %31 = vector.load %arg2[%c8, %30, %c0_10] : memref<9x8x128xf32, #tpu.memory_space<vmem>>, vector<1x8x128xf32>
    %32 = vector.shape_cast %31 : vector<1x8x128xf32> to vector<8x128xf32>
    %33 = arith.subf %14, %8 : vector<8x128xf32>
    %34 = arith.subf %17, %11 : vector<8x128xf32>
    %cst_11 = arith.constant 1.000000e-07 : f32
    %35 = vector.broadcast %cst_11 : f32 to vector<8x128xf32>
    %36 = arith.addf %34, %35 : vector<8x128xf32>
    %37 = arith.subf %26, %20 : vector<8x128xf32>
    %38 = arith.subf %29, %23 : vector<8x128xf32>
    %cst_12 = arith.constant 1.000000e-07 : f32
    %39 = vector.broadcast %cst_12 : f32 to vector<8x128xf32>
    %40 = arith.addf %38, %39 : vector<8x128xf32>
    %41 = arith.minimumf %14, %26 : vector<8x128xf32>
    %42 = arith.maximumf %8, %20 : vector<8x128xf32>
    %43 = arith.subf %41, %42 : vector<8x128xf32>
    %cst_13 = arith.constant 0.000000e+00 : f32
    %44 = vector.broadcast %cst_13 : f32 to vector<8x128xf32>
    %45 = arith.maximumf %43, %44 : vector<8x128xf32>
    %46 = arith.minimumf %17, %29 : vector<8x128xf32>
    %47 = arith.maximumf %11, %23 : vector<8x128xf32>
    %48 = arith.subf %46, %47 : vector<8x128xf32>
    %cst_14 = arith.constant 0.000000e+00 : f32
    %49 = vector.broadcast %cst_14 : f32 to vector<8x128xf32>
    %50 = arith.maximumf %48, %49 : vector<8x128xf32>
    %51 = arith.mulf %45, %50 : vector<8x128xf32>
    %52 = arith.mulf %33, %36 : vector<8x128xf32>
    %53 = arith.mulf %37, %40 : vector<8x128xf32>
    %54 = arith.addf %52, %53 : vector<8x128xf32>
    %55 = arith.subf %54, %51 : vector<8x128xf32>
    %cst_15 = arith.constant 1.000000e-07 : f32
    %56 = vector.broadcast %cst_15 : f32 to vector<8x128xf32>
    %57 = arith.addf %55, %56 : vector<8x128xf32>
    %58 = tpu.reciprocal %57 {approx = true} : vector<8x128xf32> -> vector<8x128xf32>
    %59 = arith.mulf %57, %58 : vector<8x128xf32>
    %cst_16 = arith.constant 2.000000e+00 : f32
    %60 = vector.broadcast %cst_16 : f32 to vector<8x128xf32>
    %61 = arith.subf %60, %59 : vector<8x128xf32>
    %62 = arith.mulf %58, %61 : vector<8x128xf32>
    %63 = arith.mulf %51, %62 : vector<8x128xf32>
    %64 = arith.maximumf %14, %26 : vector<8x128xf32>
    %65 = arith.minimumf %8, %20 : vector<8x128xf32>
    %66 = arith.subf %64, %65 : vector<8x128xf32>
    %67 = arith.maximumf %17, %29 : vector<8x128xf32>
    %68 = arith.minimumf %11, %23 : vector<8x128xf32>
    %69 = arith.subf %67, %68 : vector<8x128xf32>
    %70 = arith.mulf %66, %66 : vector<8x128xf32>
    %71 = arith.mulf %69, %69 : vector<8x128xf32>
    %72 = arith.addf %70, %71 : vector<8x128xf32>
    %cst_17 = arith.constant 1.000000e-07 : f32
    %73 = vector.broadcast %cst_17 : f32 to vector<8x128xf32>
    %74 = arith.addf %72, %73 : vector<8x128xf32>
    %75 = arith.addf %20, %26 : vector<8x128xf32>
    %76 = arith.subf %75, %8 : vector<8x128xf32>
    %77 = arith.subf %76, %14 : vector<8x128xf32>
    %78 = arith.addf %23, %29 : vector<8x128xf32>
    %79 = arith.subf %78, %11 : vector<8x128xf32>
    %80 = arith.subf %79, %17 : vector<8x128xf32>
    %81 = arith.mulf %77, %77 : vector<8x128xf32>
    %82 = arith.mulf %80, %80 : vector<8x128xf32>
    %83 = arith.addf %81, %82 : vector<8x128xf32>
    %cst_18 = arith.constant 2.500000e-01 : f32
    %84 = vector.broadcast %cst_18 : f32 to vector<8x128xf32>
    %85 = arith.mulf %83, %84 : vector<8x128xf32>
    %86 = arith.mulf %37, %36 : vector<8x128xf32>
    %87 = arith.mulf %33, %40 : vector<8x128xf32>
    %88 = arith.subf %86, %87 : vector<8x128xf32>
    %89 = arith.mulf %36, %40 : vector<8x128xf32>
    %90 = arith.mulf %33, %37 : vector<8x128xf32>
    %91 = arith.addf %89, %90 : vector<8x128xf32>
    %cst_19 = arith.constant 0.000000e+00 : f32
    %92 = vector.broadcast %cst_19 : f32 to vector<8x128xf32>
    %93 = arith.cmpf olt, %91, %92 : vector<8x128xf32>
    %cst_20 = arith.constant -9.99999996E-13 : f32
    %cst_21 = arith.constant 9.99999996E-13 : f32
    %94 = vector.broadcast %cst_20 : f32 to vector<8x128xf32>
    %95 = vector.broadcast %cst_21 : f32 to vector<8x128xf32>
    %96 = arith.select %93, %94, %95 : vector<8x128xi1>, vector<8x128xf32>
    %97 = arith.addf %91, %96 : vector<8x128xf32>
    %98 = tpu.reciprocal %97 {approx = true} : vector<8x128xf32> -> vector<8x128xf32>
    %99 = arith.mulf %97, %98 : vector<8x128xf32>
    %cst_22 = arith.constant 2.000000e+00 : f32
    %100 = vector.broadcast %cst_22 : f32 to vector<8x128xf32>
    %101 = arith.subf %100, %99 : vector<8x128xf32>
    %102 = arith.mulf %98, %101 : vector<8x128xf32>
    %103 = arith.mulf %88, %102 : vector<8x128xf32>
    %cst_23 = arith.constant 0.000000e+00 : f32
    %104 = vector.broadcast %cst_23 : f32 to vector<8x128xf32>
    %105 = arith.cmpf oge, %103, %104 : vector<8x128xf32>
    %cst_24 = arith.constant 1.000000e+00 : f32
    %cst_25 = arith.constant -1.000000e+00 : f32
    %106 = vector.broadcast %cst_24 : f32 to vector<8x128xf32>
    %107 = vector.broadcast %cst_25 : f32 to vector<8x128xf32>
    %108 = arith.select %105, %106, %107 : vector<8x128xi1>, vector<8x128xf32>
    %109 = math.absf %103 : vector<8x128xf32>
    %cst_26 = arith.constant 2.41421366 : f32
    %110 = vector.broadcast %cst_26 : f32 to vector<8x128xf32>
    %111 = arith.cmpf ogt, %109, %110 : vector<8x128xf32>
    %cst_27 = arith.constant 0.414213568 : f32
    %112 = vector.broadcast %cst_27 : f32 to vector<8x128xf32>
    %113 = arith.cmpf ogt, %109, %112 : vector<8x128xf32>
    %cst_28 = arith.constant dense<true> : vector<8x128xi1>
    %114 = arith.xori %111, %cst_28 : vector<8x128xi1>
    %115 = arith.andi %113, %114 : vector<8x128xi1>
    %cst_29 = arith.constant 9.99999996E-13 : f32
    %116 = vector.broadcast %cst_29 : f32 to vector<8x128xf32>
    %117 = arith.maximumf %109, %116 : vector<8x128xf32>
    %118 = tpu.reciprocal %117 {approx = true} : vector<8x128xf32> -> vector<8x128xf32>
    %119 = arith.mulf %117, %118 : vector<8x128xf32>
    %cst_30 = arith.constant 2.000000e+00 : f32
    %120 = vector.broadcast %cst_30 : f32 to vector<8x128xf32>
    %121 = arith.subf %120, %119 : vector<8x128xf32>
    %122 = arith.mulf %118, %121 : vector<8x128xf32>
    %cst_31 = arith.constant 0.000000e+00 : f32
    %123 = vector.broadcast %cst_31 : f32 to vector<8x128xf32>
    %124 = arith.subf %123, %122 : vector<8x128xf32>
    %cst_32 = arith.constant 1.000000e+00 : f32
    %125 = vector.broadcast %cst_32 : f32 to vector<8x128xf32>
    %126 = arith.subf %109, %125 : vector<8x128xf32>
    %cst_33 = arith.constant 1.000000e+00 : f32
    %127 = vector.broadcast %cst_33 : f32 to vector<8x128xf32>
    %128 = arith.addf %109, %127 : vector<8x128xf32>
    %129 = tpu.reciprocal %128 {approx = true} : vector<8x128xf32> -> vector<8x128xf32>
    %130 = arith.mulf %128, %129 : vector<8x128xf32>
    %cst_34 = arith.constant 2.000000e+00 : f32
    %131 = vector.broadcast %cst_34 : f32 to vector<8x128xf32>
    %132 = arith.subf %131, %130 : vector<8x128xf32>
    %133 = arith.mulf %129, %132 : vector<8x128xf32>
    %134 = arith.mulf %126, %133 : vector<8x128xf32>
    %135 = arith.select %115, %134, %109 : vector<8x128xi1>, vector<8x128xf32>
    %136 = arith.select %111, %124, %135 : vector<8x128xi1>, vector<8x128xf32>
    %cst_35 = arith.constant 0.785398185 : f32
    %cst_36 = arith.constant 0.000000e+00 : f32
    %137 = vector.broadcast %cst_35 : f32 to vector<8x128xf32>
    %138 = vector.broadcast %cst_36 : f32 to vector<8x128xf32>
    %139 = arith.select %115, %137, %138 : vector<8x128xi1>, vector<8x128xf32>
    %cst_37 = arith.constant 1.57079637 : f32
    %140 = vector.broadcast %cst_37 : f32 to vector<8x128xf32>
    %141 = arith.select %111, %140, %139 : vector<8x128xi1>, vector<8x128xf32>
    %142 = arith.mulf %136, %136 : vector<8x128xf32>
    %cst_38 = arith.constant 0.0805374458 : f32
    %143 = vector.broadcast %cst_38 : f32 to vector<8x128xf32>
    %144 = arith.mulf %143, %142 : vector<8x128xf32>
    %cst_39 = arith.constant 0.138776854 : f32
    %145 = vector.broadcast %cst_39 : f32 to vector<8x128xf32>
    %146 = arith.subf %144, %145 : vector<8x128xf32>
    %147 = arith.mulf %146, %142 : vector<8x128xf32>
    %cst_40 = arith.constant 0.199777111 : f32
    %148 = vector.broadcast %cst_40 : f32 to vector<8x128xf32>
    %149 = arith.addf %147, %148 : vector<8x128xf32>
    %150 = arith.mulf %149, %142 : vector<8x128xf32>
    %cst_41 = arith.constant 0.333329499 : f32
    %151 = vector.broadcast %cst_41 : f32 to vector<8x128xf32>
    %152 = arith.subf %150, %151 : vector<8x128xf32>
    %153 = arith.mulf %152, %142 : vector<8x128xf32>
    %154 = arith.mulf %153, %136 : vector<8x128xf32>
    %155 = arith.addf %154, %136 : vector<8x128xf32>
    %156 = arith.addf %141, %155 : vector<8x128xf32>
    %157 = arith.mulf %108, %156 : vector<8x128xf32>
    %cst_42 = arith.constant 0.000000e+00 : f32
    %158 = vector.broadcast %cst_42 : f32 to vector<8x128xf32>
    %159 = arith.cmpf olt, %97, %158 : vector<8x128xf32>
    %160 = arith.mulf %37, %40 : vector<8x128xf32>
    %cst_43 = arith.constant 0.000000e+00 : f32
    %161 = vector.broadcast %cst_43 : f32 to vector<8x128xf32>
    %162 = arith.cmpf ogt, %160, %161 : vector<8x128xf32>
    %cst_44 = arith.constant 3.14159274 : f32
    %cst_45 = arith.constant -3.14159274 : f32
    %163 = vector.broadcast %cst_44 : f32 to vector<8x128xf32>
    %164 = vector.broadcast %cst_45 : f32 to vector<8x128xf32>
    %165 = arith.select %162, %163, %164 : vector<8x128xi1>, vector<8x128xf32>
    %cst_46 = arith.constant 0.000000e+00 : f32
    %166 = vector.broadcast %cst_46 : f32 to vector<8x128xf32>
    %167 = arith.select %159, %165, %166 : vector<8x128xi1>, vector<8x128xf32>
    %168 = arith.addf %157, %167 : vector<8x128xf32>
    %cst_47 = arith.constant 0.405284733 : f32
    %169 = vector.broadcast %cst_47 : f32 to vector<8x128xf32>
    %170 = arith.mulf %169, %168 : vector<8x128xf32>
    %171 = arith.mulf %170, %168 : vector<8x128xf32>
    %172 = arith.subf %171, %63 : vector<8x128xf32>
    %cst_48 = arith.constant 1.00000012 : f32
    %173 = vector.broadcast %cst_48 : f32 to vector<8x128xf32>
    %174 = arith.addf %172, %173 : vector<8x128xf32>
    %175 = tpu.reciprocal %174 {approx = true} : vector<8x128xf32> -> vector<8x128xf32>
    %176 = arith.mulf %174, %175 : vector<8x128xf32>
    %cst_49 = arith.constant 2.000000e+00 : f32
    %177 = vector.broadcast %cst_49 : f32 to vector<8x128xf32>
    %178 = arith.subf %177, %176 : vector<8x128xf32>
    %179 = arith.mulf %175, %178 : vector<8x128xf32>
    %180 = arith.mulf %171, %179 : vector<8x128xf32>
    %181 = tpu.reciprocal %74 {approx = true} : vector<8x128xf32> -> vector<8x128xf32>
    %182 = arith.mulf %74, %181 : vector<8x128xf32>
    %cst_50 = arith.constant 2.000000e+00 : f32
    %183 = vector.broadcast %cst_50 : f32 to vector<8x128xf32>
    %184 = arith.subf %183, %182 : vector<8x128xf32>
    %185 = arith.mulf %181, %184 : vector<8x128xf32>
    %186 = arith.mulf %85, %185 : vector<8x128xf32>
    %187 = arith.mulf %171, %180 : vector<8x128xf32>
    %188 = arith.addf %186, %187 : vector<8x128xf32>
    %189 = arith.subf %63, %188 : vector<8x128xf32>
    %cst_51 = arith.constant 0.000000e+00 : f32
    %190 = vector.broadcast %cst_51 : f32 to vector<8x128xf32>
    %191 = arith.cmpf one, %32, %190 : vector<8x128xf32>
    %cst_52 = arith.constant 1.000000e+00 : f32
    %192 = vector.broadcast %cst_52 : f32 to vector<8x128xf32>
    %193 = arith.subf %192, %189 : vector<8x128xf32>
    %194 = arith.mulf %193, %32 : vector<8x128xf32>
    %cst_53 = arith.constant 0.000000e+00 : f32
    %195 = vector.broadcast %cst_53 : f32 to vector<8x128xf32>
    %196 = arith.select %191, %194, %195 : vector<8x128xi1>, vector<8x128xf32>
    %197 = arith.addf %3, %196 : vector<8x128xf32>
    %c1_i32 = arith.constant 1 : i32
    %c0_54 = arith.constant 0 : index
    %c0_55 = arith.constant 0 : index
    %c0_56 = arith.constant 0 : index
    %198 = vector.load %arg3[%c0_54, %c0_55, %c0_56] : memref<1x8x128xf32, #tpu.memory_space<vmem>>, vector<1x8x128xf32>
    %199 = vector.shape_cast %198 : vector<1x8x128xf32> to vector<8x128xf32>
    %200 = arith.addf %199, %197 : vector<8x128xf32>
    %c0_57 = arith.constant 0 : index
    %c0_58 = arith.constant 0 : index
    %c0_59 = arith.constant 0 : index
    %201 = vector.load %arg3[%c0_57, %c0_58, %c0_59] : memref<1x8x128xf32, #tpu.memory_space<vmem>>, vector<1x8x128xf32>
    %202 = vector.shape_cast %201 : vector<1x8x128xf32> to vector<8x128xf32>
    %203 = vector.shape_cast %200 : vector<8x128xf32> to vector<1x8x128xf32>
    tpu.vector_store %arg3[%c0_57, %c0_58, %c0_59], %203 {strides = array<i32>} : memref<1x8x128xf32, #tpu.memory_space<vmem>>, vector<1x8x128xf32>,
    return
  }
  func.func @transform_0(%arg0: i32, %arg1: i32) -> (i32, i32, i32) {
    %c1_i32 = arith.constant 1 : i32
    %0 = arith.muli %arg0, %c1_i32 : i32
    %1 = arith.addi %0, %arg1 : i32
    %c0_i32 = arith.constant 0 : i32
    %c0_i32_0 = arith.constant 0 : i32
    %c0_i32_1 = arith.constant 0 : i32
    return %c0_i32, %1, %c0_i32_0 : i32, i32, i32
  }
  func.func @transform_1(%arg0: i32, %arg1: i32) -> (i32, i32, i32) {
    %c0_i32 = arith.constant 0 : i32
    %c0_i32_0 = arith.constant 0 : i32
    %c0_i32_1 = arith.constant 0 : i32
    return %arg0, %c0_i32, %c0_i32_0 : i32, i32, i32
  }
}

</mosaic_0001>

<bundles_post_ra>
// kernel: box_loss.2
= control target key start
LH: loop header
LB: loop body
LE: loop exit
PB: predicated region body
PF: predicated region fallthrough
CT: control target
= control target key end

     0   :  { %v278_v35 = vmov 1e-12   ;;  %vm279_vm3 = vmmov 1   ;;  %s346_s0 = inlined_call_operand.vmem [shape: f32[16,8,128], index: 0, kind: input, shape index: {}]   ;;  %s347_s1 = inlined_call_operand.vmem [shape: f32[1,8,128], index: 1, kind: output, shape index: {}]  }
   0x1   :  { %v25_v0 = vld [vmem:[%s346_s0] sm:$0xff]  ;;  %v250_v1 = vld [vmem:[%s346_s0 + $0x8] sm:$0xff]  ;;  %v252_v2 = vld [vmem:[%s346_s0 + $0x18] sm:$0xff] }
   0x2   :  { %v253_v3 = vld [vmem:[%s346_s0 + $0x20] sm:$0xff]  ;;  %v254_v4 = vld [vmem:[%s346_s0 + $0x28] sm:$0xff]  ;;  %v251_v5 = vld [vmem:[%s346_s0 + $0x10] sm:$0xff]  ;;  %v108_v8 = vsub.f32 %v252_v2, %v250_v1 }
   0x3   :  { %v255_v6 = vld [vmem:[%s346_s0 + $0x30] sm:$0xff]  ;;  %v256_v7 = vld [vmem:[%s346_s0 + $0x38] sm:$0xff]  ;;  %v133_v9 = vmin.f32 %v25_v0, %v253_v3  ;;  %v136_v13 = vmin.f32 %v250_v1, %v254_v4  ;;  %v107_v14 = vsub.f32 %v251_v5, %v25_v0  ;;  %v114_v47 = vmax.f32 %v25_v0, %v253_v3 }
   0x4   :  { %v111_v10 = vsub.f32 %v256_v7, %v254_v4  ;;  %v132_v11 = vmax.f32 %v251_v5, %v255_v6  ;;  %v135_v12 = vmax.f32 %v252_v2, %v256_v7  ;;  %v109_v15 = vadd.f32 1e-07, %v108_v8 }
   0x5   :  { %v110_v16 = vsub.f32 %v255_v6, %v253_v3  ;;  %v142_v17 = vadd.f32 %v255_v6, %v253_v3  ;;  %v145_v21 = vadd.f32 %v256_v7, %v254_v4  ;;  %v113_v48 = vmin.f32 %v251_v5, %v255_v6 }
   0x6   :  { %v112_v18 = vadd.f32 1e-07, %v111_v10  ;;  %v134_v19 = vsub.f32 %v132_v11, %v133_v9  ;;  %v137_v20 = vsub.f32 %v135_v12, %v136_v13  ;;  %v117_v49 = vmin.f32 %v252_v2, %v256_v7 }
   0x7   :  { %v143_v22 = vsub.f32 %v142_v17, %v25_v0  ;;  %v146_v25 = vsub.f32 %v145_v21, %v250_v1  ;;  %v156_v30 = vmul.f32 %v110_v16, %v107_v14  ;;  %v152_v38 = vmul.f32 %v110_v16, %v109_v15 }
   0x8   :  { %v138_v23 = vmul.f32 %v134_v19, %v134_v19  ;;  %v139_v24 = vmul.f32 %v137_v20, %v137_v20  ;;  %v155_v29 = vmul.f32 %v112_v18, %v109_v15  ;;  %v153_v39 = vmul.f32 %v112_v18, %v107_v14 }
   0x9   :  { %v144_v26 = vsub.f32 %v143_v22, %v251_v5  ;;  %v147_v28 = vsub.f32 %v146_v25, %v252_v2  ;;  %v118_v50 = vmax.f32 %v250_v1, %v254_v4  ;;  %v115_v53 = vsub.f32 %v113_v48, %v114_v47 }
   0xa   :  { %v140_v27 = vadd.f32 %v139_v24, %v138_v23  ;;  %v157_v33 = vadd.f32 %v156_v30, %v155_v29  ;;  %v154_v42 = vsub.f32 %v152_v38, %v153_v39  ;;  %v122_v58 = vmul.f32 %v109_v15, %v107_v14 }
   0xb   :  { %v148_v31 = vmul.f32 %v144_v26, %v144_v26  ;;  %v149_v32 = vmul.f32 %v147_v28, %v147_v28  ;;  %v119_v54 = vsub.f32 %v117_v49, %v118_v50  ;;  %v116_v56 = vmax.f32 %v115_v53, 0.0 }
   0xc   :  { %vm158_vm0 = vcmp.lt.f32.partialorder %v157_v33, 0.0  ;;  %v123_v60 = vmul.f32 %v112_v18, %v110_v16  ;;  %v141_v12 = vadd.f32 1e-07, %v140_v27  ;;  %v280_v28 = vmov 0.0  }
   0xd   :  { %v317_v34 = vadd.f32 %v149_v32, %v148_v31  ;;  %v159_v36 = vsel %vm158_vm0, -1e-12, %v278_v35  ;;  %v120_v57 = vmax.f32 %v119_v54, 0.0  ;;  %v282_v39 = vmov -1.0  }
   0xe   :  { %v319_v37 = vadd.f32 %v159_v36, %v157_v33  ;;  %v124_v3 = vadd.f32 %v123_v60, %v122_v58  ;;  %vm203_vm6 = vcmp.gt.f32.partialorder %v123_v60, 0.0 }
   0xf   :  { %v121_v2 = vmul.f32 %v120_v57, %v116_v56  ;;  %v151_v24 = vmul.f32 0.25, %v317_v34  ;;  %v281_v34 = vmov -3.1415927   ;;  %v257_v57 = vld [vmem:[%s346_s0 + $0x40] sm:$0xff] }
  0x10   :  { %266 = vrcp.f32 %v319_v37  ;;  %vm202_vm8 = vcmp.lt.f32.partialorder %v319_v37, 0.0  ;;  %v204_v38 = vsel %vm203_vm6, 3.1415927, %v281_v34  ;;  %vm224_vm9 = vcmp.ne.f32.partialorder %v257_v57, 0.0 }
  0x11   :  { %v125_v9 = vsub.f32 %v124_v3, %v121_v2 }
  0x13   :  { %v126_v14 = vadd.f32 1e-07, %v125_v9 }
  0x16   :  { %v267_v40 = vpop.eup %266 }
  0x17   :  { %v162_v41 = vmul.f32 %v267_v40, %v319_v37 }
  0x19   :  { %v163_v43 = vsub.f32 2.0, %v162_v41 }
  0x1b   :  { %v164_v44 = vmul.f32 %v267_v40, %v163_v43 }
  0x1d   :  { %v323_v45 = vmul.f32 %v164_v44, %v154_v42  ;;  %v205_v42 = vsel %vm202_vm8, %v204_v38, 0.0 }
  0x1f   :  { %v168_v46 = vand.u32 2147483647, %v323_v45  ;;  %vm166_vm7 = vcmp.ge.f32.partialorder %v323_v45, 0.0 }
  0x20   :  { %v167_v40 = vsel %vm166_vm7, 1.0, %v282_v39 }
  0x21   :  { %v173_v51 = vmax.f32 %v168_v46, 1e-12  ;;  %v180_v52 = vadd.f32 1.0, %v168_v46  ;;  %vm169_vm1 = vcmp.gt.f32.partialorder %v168_v46, 2.4142137  ;;  %v258_v0 = vadd.f32 -1.0, %v168_v46 }
  0x22   :  { %vm170_vm2 = vcmp.gt.f32.partialorder %v168_v46, 0.41421357  ;;  %vm171_vm4 = vmxor %vm169_vm1, %vm279_vm3 }
  0x23   :  { %268 = vrcp.f32 %v173_v51  ;;  %vm327_vm5 = vmand %vm170_vm2, %vm171_vm4 }
  0x24   :  { %270 = vrcp.f32 %v180_v52  ;;  %v188_v27 = vsel %vm327_vm5, 0.7853982, %v280_v28 }
  0x25   :  { %272 = vrcp.f32 %v141_v12  ;;  %v189_v32 = vsel %vm169_vm1, 1.5707964, %v188_v27 }
  0x26   :  { %274 = vrcp.f32 %v126_v14 }
  0x29   :  { %v269_v55 = vpop.eup %268 }
  0x2a   :  { %v271_v59 = vpop.eup %270  ;;  %v175_v61 = vmul.f32 %v269_v55, %v173_v51 }
  0x2b   :  { %v182_v62 = vmul.f32 %v271_v59, %v180_v52  ;;  %v273_v19 = vpop.eup %272 }
  0x2c   :  { %v176_v63 = vsub.f32 2.0, %v175_v61  ;;  %v275_v21 = vpop.eup %274  ;;  %v217_v22 = vmul.f32 %v273_v19, %v141_v12 }
  0x2d   :  { %v183_v1 = vsub.f32 2.0, %v182_v62  ;;  %v128_v26 = vmul.f32 %v275_v21, %v126_v14 }
  0x2e   :  { %v177_v4 = vmul.f32 %v269_v55, %v176_v63  ;;  %v218_v25 = vsub.f32 2.0, %v217_v22 }
  0x2f   :  { %v184_v5 = vmul.f32 %v271_v59, %v183_v1  ;;  %v129_v35 = vsub.f32 2.0, %v128_v26 }
  0x30   :  { %v178_v7 = vsub.f32 0.0, %v177_v4  ;;  %v219_v30 = vmul.f32 %v273_v19, %v218_v25 }
  0x31   :  { %v185_v8 = vmul.f32 %v258_v0, %v184_v5  ;;  %v130_v43 = vmul.f32 %v275_v21, %v129_v35 }
  0x32   :  { %v220_v33 = vmul.f32 %v219_v30, %v151_v24 }
  0x33   :  { %v186_v10 = vsel %vm327_vm5, %v185_v8, %v168_v46  ;;  %v131_v48 = vmul.f32 %v130_v43, %v121_v2 }
  0x34   :  { %v187_v11 = vsel %vm169_vm1, %v178_v7, %v186_v10 }
  0x35   :  { %v190_v13 = vmul.f32 %v187_v11, %v187_v11 }
  0x37   :  { %v191_v15 = vmul.f32 0.080537446, %v190_v13 }
  0x39   :  { %v259_v16 = vadd.f32 -0.13877685, %v191_v15 }
  0x3b   :  { %v193_v17 = vmul.f32 %v259_v16, %v190_v13 }
  0x3d   :  { %v194_v18 = vadd.f32 0.19977711, %v193_v17 }
  0x3f   :  { %v195_v20 = vmul.f32 %v194_v18, %v190_v13 }
  0x41   :  { %v260_v23 = vadd.f32 -0.3333295, %v195_v20 }
  0x43   :  { %v197_v29 = vmul.f32 %v260_v23, %v190_v13 }
  0x45   :  { %v198_v31 = vmul.f32 %v197_v29, %v187_v11 }
  0x47   :  { %v199_v36 = vadd.f32 %v198_v31, %v187_v11 }
  0x49   :  { %v200_v41 = vadd.f32 %v199_v36, %v189_v32 }
  0x4b   :  { %v201_v44 = vmul.f32 %v200_v41, %v167_v40 }
  0x4d   :  { %v206_v47 = vadd.f32 %v205_v42, %v201_v44 }
  0x4f   :  { %v207_v49 = vmul.f32 0.40528473, %v206_v47 }
  0x51   :  { %v208_v45 = vmul.f32 %v207_v49, %v206_v47 }
  0x53   :  { %v209_v50 = vsub.f32 %v208_v45, %v131_v48 }
  0x55   :  { %v210_v46 = vadd.f32 1.0000001, %v209_v50 }
  0x57   :  { %276 = vrcp.f32 %v210_v46 }
  0x5d   :  { %v277_v51 = vpop.eup %276 }
  0x5e   :  { %v212_v52 = vmul.f32 %v277_v51, %v210_v46 }
  0x60   :  { %v213_v53 = vsub.f32 2.0, %v212_v52 }
  0x62   :  { %v214_v54 = vmul.f32 %v277_v51, %v213_v53 }
  0x64   :  { %v215_v37 = vmul.f32 %v214_v54, %v208_v45 }
  0x66   :  { %v221_v55 = vmul.f32 %v215_v37, %v208_v45 }
  0x68   :  { %v222_v56 = vadd.f32 %v221_v55, %v220_v33 }
  0x6a   :  { %v223_v58 = vsub.f32 %v131_v48, %v222_v56 }
  0x6c   :  { %v225_v59 = vsub.f32 1.0, %v223_v58 }
  0x6e   :  { %v226_v60 = vmul.f32 %v257_v57, %v225_v59 }
  0x70   :  { %v227_v61 = vsel %vm224_vm9, %v226_v60, 0.0 }
  0x71   :  { %231 = vst [vmem:[%s347_s1] sm:$0xff] %v227_v61 }

</bundles_post_ra>
